<compile_context>
chip_gen: v6e
topology: v6e:2x2x1
jax: 0.10.0
libtpu: 0.0.40
codegen_flags: <defaults>
</compile_context>

<pallas_src>
import functools
import math

import jax
import jax.numpy as jnp
from jax.experimental import pallas as pl
from jax.experimental.pallas import tpu as pltpu

# "parameters.json" values, small and consistent with the module.
D_MODEL = 32
N_HEADS = 4
DIM_FF = 64
EPS = 1e-5
NEG_INF = -1e9


def _layer_norm(z, g, b):
    mu = jnp.mean(z, axis=-1, keepdims=True)
    var = jnp.mean((z - mu) ** 2, axis=-1, keepdims=True)
    return (z - mu) * jax.lax.rsqrt(var + EPS) * g + b


def encoder_layer_kernel(n_heads,
                         x_ref, mask_ref, vecs_ref, wqkv_ref, bqkv_ref,
                         wo_ref, w1_ref, bf1_ref, w2_ref, o_ref):
    # x_ref: (TB, S, D) -- TB batch rows per grid step.
    # mask_ref: (TB, 1, S) additive key-padding mask (0 = attend, -1e9 = pad).
    # wo_ref: (H, dh, D) head-split output projection.
    TB, S, D = x_ref.shape
    H = n_heads
    dh = D // H
    N = TB * S
    HB = H * TB

    # Flatten batch into the sublane (M) dim for the row-wise projections.
    # S == 8 matches the f32 sublane tile, so this reshape is layout-free.
    x = x_ref[...].reshape(N, D)

    g1, b1 = vecs_ref[0:1], vecs_ref[1:2]
    g2, b2 = vecs_ref[2:3], vecs_ref[3:4]
    bo, bf2 = vecs_ref[4:5], vecs_ref[5:6]

    # ---- sublayer 1: pre-norm + multi-head self-attention + residual ----
    x1 = _layer_norm(x, g1, b1)

    # Fused QKV projection on the whole (N, D) slab (one MXU pass, M = N rows).
    qkv = (jnp.dot(x1, wqkv_ref[...], preferred_element_type=jnp.float32)
           + bqkv_ref[...])                                   # (N, 3D)
    q, k, v = qkv[:, :D], qkv[:, D:2 * D], qkv[:, 2 * D:]

    # Per-head split along the lane dim, stacked along a *major* axis, then the
    # batch axis is peeled off the sublane dim: (H, N, dh) -> (H*TB, S, dh).
    # Both reshapes only touch major / tile-aligned sublane boundaries.
    def to_heads(z):
        zh = jnp.stack([z[:, h * dh:(h + 1) * dh] for h in range(H)], axis=0)
        return zh.reshape(HB, S, dh)

    qh, kh, vh = to_heads(q), to_heads(k), to_heads(v)

    # Additive key-padding mask, broadcast over heads (host already made it
    # additive, so no compare/select here).
    add_mask = jnp.broadcast_to(mask_ref[...][None], (H, TB, 1, S)).reshape(HB, 1, S)

    # Scores with a true batch axis: O(TB * S^2) per head, not O((TB*S)^2).
    scale = 1.0 / math.sqrt(dh)
    s = jnp.einsum('bqd,bkd->bqk', qh, kh,
                   preferred_element_type=jnp.float32) * scale   # (HB, S, S)
    s = s + add_mask

    m = jnp.max(s, axis=-1, keepdims=True)
    p = jnp.exp(s - m)
    p = p * pl.reciprocal(jnp.sum(p, axis=-1, keepdims=True), approx=True)

    oh = jnp.einsum('bqk,bkd->bqd', p, vh,
                    preferred_element_type=jnp.float32)          # (HB, S, dh)

    # Output projection with the head-concat folded in:
    #   attn = sum_h oh[h] @ wo[h]   (no minor-dim concatenate).
    oh3 = oh.reshape(H, N, dh)                                   # major-only merge
    proj = jnp.dot(oh3[0], wo_ref[0], preferred_element_type=jnp.float32)
    for h in range(1, H):
        proj = proj + jnp.dot(oh3[h], wo_ref[h], preferred_element_type=jnp.float32)

    xr = x + proj + bo          # dropout_1 = identity (eval)

    # ---- sublayer 2: pre-norm + feed-forward + residual ----
    x2 = _layer_norm(xr, g2, b2)
    h1 = jnp.dot(x2, w1_ref[...], preferred_element_type=jnp.float32) + bf1_ref[...]
    h1 = jnp.maximum(h1, 0.0)
    ff = jnp.dot(h1, w2_ref[...], preferred_element_type=jnp.float32) + bf2

    o_ref[...] = (xr + ff).reshape(TB, S, D)   # dropout_2 = identity (eval)


def _choose_tb(B, S, rows_cap=512):
    # After the batch-axis score restructure, per-step VMEM scales linearly in
    # tb*S, so rows_cap is a pipelining / step-overhead tradeoff, not a VMEM
    # limit: ~256-512 rows per step amortizes the ~0.35 us step overhead while
    # >= 2 grid steps lets BlockSpec double-buffering overlap x/out DMA with
    # compute.  Blocks are (tb, S, D), so no (8, 128) alignment constrains tb.
    if B * S <= rows_cap:
        return B                       # tiny problem: single step
    cands = [tb for tb in range(B, 0, -1) if B % tb == 0 and tb * S <= rows_cap]
    if not cands:
        return 1                       # S alone exceeds the cap: 1 batch/step
    # Prefer an even number of grid steps so v7x's 2 TensorCores stay balanced
    # on the "parallel" axis (no effect on single-TC v5e/v6e).
    even = [tb for tb in cands if (B // tb) % 2 == 0]
    return even[0] if even else cands[0]


def encoder_layer(x, e_mask, params):
    (g1, b1, g2, b2, wq, bq, wk, bk, wv, bv, wo, bo, w1, bf1, w2, bf2) = params
    B, S, D = x.shape
    H = N_HEADS
    dh = D // H

    # Pack parameters: fused QKV weight/bias, head-split output projection,
    # and all (1, D) vectors in one array (fewer DMA descriptors / buffers).
    wqkv = jnp.concatenate([wq, wk, wv], axis=1)               # (D, 3D)
    bqkv = jnp.concatenate([bq, bk, bv], axis=1)               # (1, 3D)
    vecs = jnp.concatenate([g1, b1, g2, b2, bo, bf2], axis=0)  # (6, D)
    wo_heads = wo.reshape(H, dh, D)                            # (H, dh, D)

    # Host-side additive key-padding mask: 0 = attend, NEG_INF = padded key.
    add_mask = jnp.where(e_mask > 0.0, 0.0, NEG_INF).astype(jnp.float32)  # (B,1,S)

    tb = _choose_tb(B, S)
    grid = (B // tb,)

    rep = lambda p: pl.BlockSpec(p.shape, lambda i, _n=None, _p=p: (0,) * p.ndim)
    kernel = functools.partial(encoder_layer_kernel, H)

    # Splitting a microsecond-scale single-step kernel across the 2 v7x TCs is
    # pure overhead; only ask for megacore parallelism if there are >= 2 steps.
    sem = ("parallel",) if grid[0] > 1 else ("arbitrary",)

    out = pl.pallas_call(
        kernel,
        out_shape=jax.ShapeDtypeStruct((B, S, D), x.dtype),
        grid_spec=pltpu.PrefetchScalarGridSpec(
            num_scalar_prefetch=0,
            grid=grid,
            in_specs=[
                pl.BlockSpec((tb, S, D), lambda i: (i, 0, 0)),  # x block
                pl.BlockSpec((tb, 1, S), lambda i: (i, 0, 0)),  # additive mask
                rep(vecs), rep(wqkv), rep(bqkv), rep(wo_heads),
                rep(w1), rep(bf1), rep(w2),
            ],
            out_specs=pl.BlockSpec((tb, S, D), lambda i: (i, 0, 0)),
        ),
        compiler_params=pltpu.CompilerParams(dimension_semantics=sem),
    )(x, add_mask, vecs, wqkv, bqkv, wo_heads, w1, bf1, w2)

    return out


def make_params(key):
    ks = jax.random.split(key, 8)
    std = 0.02
    g1 = jnp.ones((1, D_MODEL), jnp.float32)
    b1 = jnp.zeros((1, D_MODEL), jnp.float32)
    g2 = jnp.ones((1, D_MODEL), jnp.float32)
    b2 = jnp.zeros((1, D_MODEL), jnp.float32)
    wq = std * jax.random.normal(ks[0], (D_MODEL, D_MODEL), jnp.float32)
    wk = std * jax.random.normal(ks[1], (D_MODEL, D_MODEL), jnp.float32)
    wv = std * jax.random.normal(ks[2], (D_MODEL, D_MODEL), jnp.float32)
    wo = std * jax.random.normal(ks[3], (D_MODEL, D_MODEL), jnp.float32)
    bq = jnp.zeros((1, D_MODEL), jnp.float32)
    bk = jnp.zeros((1, D_MODEL), jnp.float32)
    bv = jnp.zeros((1, D_MODEL), jnp.float32)
    bo = std * jax.random.normal(ks[4], (1, D_MODEL), jnp.float32)
    w1 = std * jax.random.normal(ks[5], (D_MODEL, DIM_FF), jnp.float32)
    bf1 = std * jax.random.normal(ks[6], (1, DIM_FF), jnp.float32)
    w2 = std * jax.random.normal(ks[7], (DIM_FF, D_MODEL), jnp.float32)
    bf2 = jnp.zeros((1, D_MODEL), jnp.float32)
    return (g1, b1, g2, b2, wq, bq, wk, bk, wv, bv, wo, bo, w1, bf1, w2, bf2)


def ref_forward(x, e_mask, params):
    (g1, b1, g2, b2, wq, bq, wk, bk, wv, bv, wo, bo, w1, bf1, w2, bf2) = params

    def ln(z, g, b):
        mu = z.mean(-1, keepdims=True)
        var = ((z - mu) ** 2).mean(-1, keepdims=True)
        return (z - mu) / jnp.sqrt(var + EPS) * g + b

    B, S, D = x.shape
    dh = D // N_HEADS
    x1 = ln(x, g1, b1)
    q = (x1 @ wq + bq).reshape(B, S, N_HEADS, dh).transpose(0, 2, 1, 3)
    k = (x1 @ wk + bk).reshape(B, S, N_HEADS, dh).transpose(0, 2, 1, 3)
    v = (x1 @ wv + bv).reshape(B, S, N_HEADS, dh).transpose(0, 2, 1, 3)
    s = jnp.einsum('bhqd,bhkd->bhqk', q, k) * (1.0 / (dh ** 0.5))
    s = jnp.where(e_mask[:, None, :, :] > 0.0, s, NEG_INF)
    p = jax.nn.softmax(s, axis=-1)
    o = jnp.einsum('bhqk,bhkd->bhqd', p, v).transpose(0, 2, 1, 3).reshape(B, S, D)
    xr = x + o @ wo + bo
    x2 = ln(xr, g2, b2)
    return xr + jnp.maximum(x2 @ w1 + bf1, 0.0) @ w2 + bf2


if __name__ == "__main__":
    key = jax.random.PRNGKey(0)
    kx, kp = jax.random.split(key)

    B, S = 2, 8
    x = jax.random.normal(kx, (B, S, D_MODEL), jnp.float32)
    # mask: batch 0 fully valid, batch 1 has last 2 key positions padded
    e_mask = jnp.ones((B, 1, S), jnp.float32)
    e_mask = e_mask.at[1, 0, S - 2:].set(0.0)

    params = make_params(kp)

    out = encoder_layer(x, e_mask, params)
    out = jax.block_until_ready(out)

    ref = ref_forward(x, e_mask, params)
    assert out.shape == (B, S, D_MODEL)
    # tolerance slightly loosened vs 1e-4 to cover the approx EUP reciprocal
    assert jnp.allclose(out, ref, atol=2e-4, rtol=2e-4), "mismatch vs JAX reference"

    print("KERNEL_OK")
</pallas_src>

<mosaic_0001>
module attributes {stable_mosaic.version = 11 : i64} {
  func.func @encoder_layer_kernel(%arg0: i32, %arg1: memref<2x8x32xf32, #tpu.memory_space<vmem>>, %arg2: memref<2x1x8xf32, #tpu.memory_space<vmem>>, %arg3: memref<6x32xf32, #tpu.memory_space<vmem>>, %arg4: memref<32x96xf32, #tpu.memory_space<vmem>>, %arg5: memref<1x96xf32, #tpu.memory_space<vmem>>, %arg6: memref<4x8x32xf32, #tpu.memory_space<vmem>>, %arg7: memref<32x64xf32, #tpu.memory_space<vmem>>, %arg8: memref<1x64xf32, #tpu.memory_space<vmem>>, %arg9: memref<64x32xf32, #tpu.memory_space<vmem>>, %arg10: memref<2x8x32xf32, #tpu.memory_space<vmem>>) attributes {dimension_semantics = [#tpu.dimension_semantics<arbitrary>], iteration_bounds = array<i64: 1>, scalar_prefetch = 0 : i64, scratch_operands = 0 : i64, tpu.core_type = #tpu.core_type<tc>, window_params = [{transform_indices = @transform_0, window_bounds = array<i64: 2, 8, 32>}, {transform_indices = @transform_1, window_bounds = array<i64: 2, 1, 8>}, {pipeline_mode = #tpu.pipeline_mode<synchronous>, transform_indices = @transform_2, window_bounds = array<i64: 6, 32>}, {pipeline_mode = #tpu.pipeline_mode<synchronous>, transform_indices = @transform_3, window_bounds = array<i64: 32, 96>}, {pipeline_mode = #tpu.pipeline_mode<synchronous>, transform_indices = @transform_4, window_bounds = array<i64: 1, 96>}, {pipeline_mode = #tpu.pipeline_mode<synchronous>, transform_indices = @transform_5, window_bounds = array<i64: 4, 8, 32>}, {pipeline_mode = #tpu.pipeline_mode<synchronous>, transform_indices = @transform_6, window_bounds = array<i64: 32, 64>}, {pipeline_mode = #tpu.pipeline_mode<synchronous>, transform_indices = @transform_7, window_bounds = array<i64: 1, 64>}, {pipeline_mode = #tpu.pipeline_mode<synchronous>, transform_indices = @transform_8, window_bounds = array<i64: 64, 32>}, {transform_indices = @transform_9, window_bounds = array<i64: 2, 8, 32>}]} {
    %c0 = arith.constant 0 : index
    %c0_0 = arith.constant 0 : index
    %c0_1 = arith.constant 0 : index
    %0 = vector.load %arg1[%c0, %c0_0, %c0_1] : memref<2x8x32xf32, #tpu.memory_space<vmem>>, vector<2x8x32xf32>
    %1 = vector.shape_cast %0 : vector<2x8x32xf32> to vector<16x32xf32>
    %c0_2 = arith.constant 0 : index
    %c0_3 = arith.constant 0 : index
    %2 = vector.load %arg3[%c0_2, %c0_3] : memref<6x32xf32, #tpu.memory_space<vmem>>, vector<1x32xf32>
    %c1 = arith.constant 1 : index
    %c0_4 = arith.constant 0 : index
    %3 = vector.load %arg3[%c1, %c0_4] : memref<6x32xf32, #tpu.memory_space<vmem>>, vector<1x32xf32>
    %c2 = arith.constant 2 : index
    %c0_5 = arith.constant 0 : index
    %4 = vector.load %arg3[%c2, %c0_5] : memref<6x32xf32, #tpu.memory_space<vmem>>, vector<1x32xf32>
    %c3 = arith.constant 3 : index
    %c0_6 = arith.constant 0 : index
    %5 = vector.load %arg3[%c3, %c0_6] : memref<6x32xf32, #tpu.memory_space<vmem>>, vector<1x32xf32>
    %c4 = arith.constant 4 : index
    %c0_7 = arith.constant 0 : index
    %6 = vector.load %arg3[%c4, %c0_7] : memref<6x32xf32, #tpu.memory_space<vmem>>, vector<1x32xf32>
    %c5 = arith.constant 5 : index
    %c0_8 = arith.constant 0 : index
    %7 = vector.load %arg3[%c5, %c0_8] : memref<6x32xf32, #tpu.memory_space<vmem>>, vector<1x32xf32>
    %cst = arith.constant dense<0.000000e+00> : vector<16xf32>
    %8 = vector.multi_reduction <add>, %1, %cst [1] : vector<16x32xf32> to vector<16xf32>
    %9 = vector.shape_cast %8 : vector<16xf32> to vector<16x1xf32>
    %cst_9 = arith.constant 3.200000e+01 : f32
    %10 = vector.broadcast %cst_9 : f32 to vector<16x1xf32>
    %11 = arith.divf %9, %10 : vector<16x1xf32>
    %12 = vector.broadcast %11 : vector<16x1xf32> to vector<16x32xf32>
    %13 = arith.subf %1, %12 : vector<16x32xf32>
    %14 = arith.mulf %13, %13 : vector<16x32xf32>
    %cst_10 = arith.constant dense<0.000000e+00> : vector<16xf32>
    %15 = vector.multi_reduction <add>, %14, %cst_10 [1] : vector<16x32xf32> to vector<16xf32>
    %16 = vector.shape_cast %15 : vector<16xf32> to vector<16x1xf32>
    %cst_11 = arith.constant 3.200000e+01 : f32
    %17 = vector.broadcast %cst_11 : f32 to vector<16x1xf32>
    %18 = arith.divf %16, %17 : vector<16x1xf32>
    %19 = vector.broadcast %11 : vector<16x1xf32> to vector<16x32xf32>
    %20 = arith.subf %1, %19 : vector<16x32xf32>
    %cst_12 = arith.constant 9.99999974E-6 : f32
    %21 = vector.broadcast %cst_12 : f32 to vector<16x1xf32>
    %22 = arith.addf %18, %21 : vector<16x1xf32>
    %23 = math.rsqrt %22 : vector<16x1xf32>
    %24 = vector.broadcast %23 : vector<16x1xf32> to vector<16x32xf32>
    %25 = arith.mulf %20, %24 : vector<16x32xf32>
    %26 = vector.broadcast %2 : vector<1x32xf32> to vector<16x32xf32>
    %27 = arith.mulf %25, %26 : vector<16x32xf32>
    %28 = vector.broadcast %3 : vector<1x32xf32> to vector<16x32xf32>
    %29 = arith.addf %27, %28 : vector<16x32xf32>
    %c0_13 = arith.constant 0 : index
    %c0_14 = arith.constant 0 : index
    %30 = vector.load %arg4[%c0_13, %c0_14] : memref<32x96xf32, #tpu.memory_space<vmem>>, vector<32x96xf32>
    %cst_15 = arith.constant dense<0.000000e+00> : vector<16x96xf32>
    %31 = tpu.matmul %29, %30, %cst_15 {dimension_numbers = #tpu.dot_dimension_numbers<[1], [0], [0], [1], [0, 0, 1, 1], [], []>} : vector<16x32xf32>, vector<32x96xf32>, vector<16x96xf32> -> vector<16x96xf32>
    %c0_16 = arith.constant 0 : index
    %c0_17 = arith.constant 0 : index
    %32 = vector.load %arg5[%c0_16, %c0_17] : memref<1x96xf32, #tpu.memory_space<vmem>>, vector<1x96xf32>
    %33 = vector.broadcast %32 : vector<1x96xf32> to vector<16x96xf32>
    %34 = arith.addf %31, %33 : vector<16x96xf32>
    %35 = vector.extract_strided_slice %34 {offsets = [0, 0], sizes = [16, 32], strides = [1, 1]} : vector<16x96xf32> to vector<16x32xf32>
    %36 = vector.extract_strided_slice %34 {offsets = [0, 32], sizes = [16, 32], strides = [1, 1]} : vector<16x96xf32> to vector<16x32xf32>
    %37 = vector.extract_strided_slice %34 {offsets = [0, 64], sizes = [16, 32], strides = [1, 1]} : vector<16x96xf32> to vector<16x32xf32>
    %38 = vector.extract_strided_slice %35 {offsets = [0, 0], sizes = [16, 8], strides = [1, 1]} : vector<16x32xf32> to vector<16x8xf32>
    %39 = vector.extract_strided_slice %35 {offsets = [0, 8], sizes = [16, 8], strides = [1, 1]} : vector<16x32xf32> to vector<16x8xf32>
    %40 = vector.extract_strided_slice %35 {offsets = [0, 16], sizes = [16, 8], strides = [1, 1]} : vector<16x32xf32> to vector<16x8xf32>
    %41 = vector.extract_strided_slice %35 {offsets = [0, 24], sizes = [16, 8], strides = [1, 1]} : vector<16x32xf32> to vector<16x8xf32>
    %42 = vector.shape_cast %38 : vector<16x8xf32> to vector<1x16x8xf32>
    %43 = vector.shape_cast %39 : vector<16x8xf32> to vector<1x16x8xf32>
    %44 = vector.shape_cast %40 : vector<16x8xf32> to vector<1x16x8xf32>
    %45 = vector.shape_cast %41 : vector<16x8xf32> to vector<1x16x8xf32>
    %46 = tpu.concatenate %42, %43, %44, %45 in 0 : vector<1x16x8xf32>, vector<1x16x8xf32>, vector<1x16x8xf32>, vector<1x16x8xf32> -> vector<4x16x8xf32>
    %47 = vector.shape_cast %46 : vector<4x16x8xf32> to vector<8x8x8xf32>
    %48 = vector.extract_strided_slice %36 {offsets = [0, 0], sizes = [16, 8], strides = [1, 1]} : vector<16x32xf32> to vector<16x8xf32>
    %49 = vector.extract_strided_slice %36 {offsets = [0, 8], sizes = [16, 8], strides = [1, 1]} : vector<16x32xf32> to vector<16x8xf32>
    %50 = vector.extract_strided_slice %36 {offsets = [0, 16], sizes = [16, 8], strides = [1, 1]} : vector<16x32xf32> to vector<16x8xf32>
    %51 = vector.extract_strided_slice %36 {offsets = [0, 24], sizes = [16, 8], strides = [1, 1]} : vector<16x32xf32> to vector<16x8xf32>
    %52 = vector.shape_cast %48 : vector<16x8xf32> to vector<1x16x8xf32>
    %53 = vector.shape_cast %49 : vector<16x8xf32> to vector<1x16x8xf32>
    %54 = vector.shape_cast %50 : vector<16x8xf32> to vector<1x16x8xf32>
    %55 = vector.shape_cast %51 : vector<16x8xf32> to vector<1x16x8xf32>
    %56 = tpu.concatenate %52, %53, %54, %55 in 0 : vector<1x16x8xf32>, vector<1x16x8xf32>, vector<1x16x8xf32>, vector<1x16x8xf32> -> vector<4x16x8xf32>
    %57 = vector.shape_cast %56 : vector<4x16x8xf32> to vector<8x8x8xf32>
    %58 = vector.extract_strided_slice %37 {offsets = [0, 0], sizes = [16, 8], strides = [1, 1]} : vector<16x32xf32> to vector<16x8xf32>
    %59 = vector.extract_strided_slice %37 {offsets = [0, 8], sizes = [16, 8], strides = [1, 1]} : vector<16x32xf32> to vector<16x8xf32>
    %60 = vector.extract_strided_slice %37 {offsets = [0, 16], sizes = [16, 8], strides = [1, 1]} : vector<16x32xf32> to vector<16x8xf32>
    %61 = vector.extract_strided_slice %37 {offsets = [0, 24], sizes = [16, 8], strides = [1, 1]} : vector<16x32xf32> to vector<16x8xf32>
    %62 = vector.shape_cast %58 : vector<16x8xf32> to vector<1x16x8xf32>
    %63 = vector.shape_cast %59 : vector<16x8xf32> to vector<1x16x8xf32>
    %64 = vector.shape_cast %60 : vector<16x8xf32> to vector<1x16x8xf32>
    %65 = vector.shape_cast %61 : vector<16x8xf32> to vector<1x16x8xf32>
    %66 = tpu.concatenate %62, %63, %64, %65 in 0 : vector<1x16x8xf32>, vector<1x16x8xf32>, vector<1x16x8xf32>, vector<1x16x8xf32> -> vector<4x16x8xf32>
    %67 = vector.shape_cast %66 : vector<4x16x8xf32> to vector<8x8x8xf32>
    %c0_18 = arith.constant 0 : index
    %c0_19 = arith.constant 0 : index
    %c0_20 = arith.constant 0 : index
    %68 = vector.load %arg2[%c0_18, %c0_19, %c0_20] : memref<2x1x8xf32, #tpu.memory_space<vmem>>, vector<2x1x8xf32>
    %69 = vector.shape_cast %68 : vector<2x1x8xf32> to vector<1x2x1x8xf32>
    %70 = vector.shape_cast %69 : vector<1x2x1x8xf32> to vector<1x2x1x8xf32>
    %71 = vector.broadcast %70 : vector<1x2x1x8xf32> to vector<4x2x1x8xf32>
    %72 = vector.shape_cast %71 : vector<4x2x1x8xf32> to vector<8x1x8xf32>
    "tpu.trace_start"() <{level = 10 : i32, message = "bqd,bkd->bqk"}> : () -> ()
    %cst_21 = arith.constant dense<0.000000e+00> : vector<8x8x8xf32>
    %73 = tpu.matmul %47, %57, %cst_21 {dimension_numbers = #tpu.dot_dimension_numbers<[2], [2], [1], [1], [0, 0, 0, 1, 1, 1], [0], [0]>} : vector<8x8x8xf32>, vector<8x8x8xf32>, vector<8x8x8xf32> -> vector<8x8x8xf32>
    "tpu.trace_stop"() : () -> ()
    %cst_22 = arith.constant 0.353553385 : f32
    %74 = vector.broadcast %cst_22 : f32 to vector<8x8x8xf32>
    %75 = arith.mulf %73, %74 : vector<8x8x8xf32>
    %76 = vector.broadcast %72 : vector<8x1x8xf32> to vector<8x8x8xf32>
    %77 = arith.addf %75, %76 : vector<8x8x8xf32>
    %cst_23 = arith.constant dense<0xFF800000> : vector<8x8xf32>
    %78 = vector.multi_reduction <maximumf>, %77, %cst_23 [2] : vector<8x8x8xf32> to vector<8x8xf32>
    %79 = vector.shape_cast %78 : vector<8x8xf32> to vector<8x8x1xf32>
    %80 = vector.broadcast %79 : vector<8x8x1xf32> to vector<8x8x8xf32>
    %81 = arith.subf %77, %80 : vector<8x8x8xf32>
    %82 = math.exp %81 : vector<8x8x8xf32>
    %cst_24 = arith.constant dense<0.000000e+00> : vector<8x8xf32>
    %83 = vector.multi_reduction <add>, %82, %cst_24 [2] : vector<8x8x8xf32> to vector<8x8xf32>
    %84 = vector.shape_cast %83 : vector<8x8xf32> to vector<8x8x1xf32>
    %85 = tpu.reciprocal %84 {approx = true} : vector<8x8x1xf32> -> vector<8x8x1xf32>
    %86 = vector.broadcast %85 : vector<8x8x1xf32> to vector<8x8x8xf32>
    %87 = arith.mulf %82, %86 : vector<8x8x8xf32>
    "tpu.trace_start"() <{level = 10 : i32, message = "bqk,bkd->bqd"}> : () -> ()
    %cst_25 = arith.constant dense<0.000000e+00> : vector<8x8x8xf32>
    %88 = tpu.matmul %87, %67, %cst_25 {dimension_numbers = #tpu.dot_dimension_numbers<[2], [1], [1], [2], [0, 0, 0, 1, 1, 2], [0], [0]>} : vector<8x8x8xf32>, vector<8x8x8xf32>, vector<8x8x8xf32> -> vector<8x8x8xf32>
    "tpu.trace_stop"() : () -> ()
    %89 = vector.shape_cast %88 : vector<8x8x8xf32> to vector<4x16x8xf32>
    %90 = vector.extract_strided_slice %89 {offsets = [0, 0, 0], sizes = [1, 16, 8], strides = [1, 1, 1]} : vector<4x16x8xf32> to vector<1x16x8xf32>
    %91 = vector.shape_cast %90 : vector<1x16x8xf32> to vector<16x8xf32>
    %c0_26 = arith.constant 0 : index
    %c0_27 = arith.constant 0 : index
    %c0_28 = arith.constant 0 : index
    %92 = vector.load %arg6[%c0_26, %c0_27, %c0_28] : memref<4x8x32xf32, #tpu.memory_space<vmem>>, vector<1x8x32xf32>
    %93 = vector.shape_cast %92 : vector<1x8x32xf32> to vector<8x32xf32>
    %cst_29 = arith.constant dense<0.000000e+00> : vector<16x32xf32>
    %94 = tpu.matmul %91, %93, %cst_29 {dimension_numbers = #tpu.dot_dimension_numbers<[1], [0], [0], [1], [0, 0, 1, 1], [], []>} : vector<16x8xf32>, vector<8x32xf32>, vector<16x32xf32> -> vector<16x32xf32>
    %95 = vector.extract_strided_slice %89 {offsets = [1, 0, 0], sizes = [1, 16, 8], strides = [1, 1, 1]} : vector<4x16x8xf32> to vector<1x16x8xf32>
    %96 = vector.shape_cast %95 : vector<1x16x8xf32> to vector<16x8xf32>
    %c1_30 = arith.constant 1 : index
    %c0_31 = arith.constant 0 : index
    %c0_32 = arith.constant 0 : index
    %97 = vector.load %arg6[%c1_30, %c0_31, %c0_32] : memref<4x8x32xf32, #tpu.memory_space<vmem>>, vector<1x8x32xf32>
    %98 = vector.shape_cast %97 : vector<1x8x32xf32> to vector<8x32xf32>
    %cst_33 = arith.constant dense<0.000000e+00> : vector<16x32xf32>
    %99 = tpu.matmul %96, %98, %cst_33 {dimension_numbers = #tpu.dot_dimension_numbers<[1], [0], [0], [1], [0, 0, 1, 1], [], []>} : vector<16x8xf32>, vector<8x32xf32>, vector<16x32xf32> -> vector<16x32xf32>
    %100 = arith.addf %94, %99 : vector<16x32xf32>
    %101 = vector.extract_strided_slice %89 {offsets = [2, 0, 0], sizes = [1, 16, 8], strides = [1, 1, 1]} : vector<4x16x8xf32> to vector<1x16x8xf32>
    %102 = vector.shape_cast %101 : vector<1x16x8xf32> to vector<16x8xf32>
    %c2_34 = arith.constant 2 : index
    %c0_35 = arith.constant 0 : index
    %c0_36 = arith.constant 0 : index
    %103 = vector.load %arg6[%c2_34, %c0_35, %c0_36] : memref<4x8x32xf32, #tpu.memory_space<vmem>>, vector<1x8x32xf32>
    %104 = vector.shape_cast %103 : vector<1x8x32xf32> to vector<8x32xf32>
    %cst_37 = arith.constant dense<0.000000e+00> : vector<16x32xf32>
    %105 = tpu.matmul %102, %104, %cst_37 {dimension_numbers = #tpu.dot_dimension_numbers<[1], [0], [0], [1], [0, 0, 1, 1], [], []>} : vector<16x8xf32>, vector<8x32xf32>, vector<16x32xf32> -> vector<16x32xf32>
    %106 = arith.addf %100, %105 : vector<16x32xf32>
    %107 = vector.extract_strided_slice %89 {offsets = [3, 0, 0], sizes = [1, 16, 8], strides = [1, 1, 1]} : vector<4x16x8xf32> to vector<1x16x8xf32>
    %108 = vector.shape_cast %107 : vector<1x16x8xf32> to vector<16x8xf32>
    %c3_38 = arith.constant 3 : index
    %c0_39 = arith.constant 0 : index
    %c0_40 = arith.constant 0 : index
    %109 = vector.load %arg6[%c3_38, %c0_39, %c0_40] : memref<4x8x32xf32, #tpu.memory_space<vmem>>, vector<1x8x32xf32>
    %110 = vector.shape_cast %109 : vector<1x8x32xf32> to vector<8x32xf32>
    %cst_41 = arith.constant dense<0.000000e+00> : vector<16x32xf32>
    %111 = tpu.matmul %108, %110, %cst_41 {dimension_numbers = #tpu.dot_dimension_numbers<[1], [0], [0], [1], [0, 0, 1, 1], [], []>} : vector<16x8xf32>, vector<8x32xf32>, vector<16x32xf32> -> vector<16x32xf32>
    %112 = arith.addf %106, %111 : vector<16x32xf32>
    %113 = arith.addf %1, %112 : vector<16x32xf32>
    %114 = vector.broadcast %6 : vector<1x32xf32> to vector<16x32xf32>
    %115 = arith.addf %113, %114 : vector<16x32xf32>
    %cst_42 = arith.constant dense<0.000000e+00> : vector<16xf32>
    %116 = vector.multi_reduction <add>, %115, %cst_42 [1] : vector<16x32xf32> to vector<16xf32>
    %117 = vector.shape_cast %116 : vector<16xf32> to vector<16x1xf32>
    %cst_43 = arith.constant 3.200000e+01 : f32
    %118 = vector.broadcast %cst_43 : f32 to vector<16x1xf32>
    %119 = arith.divf %117, %118 : vector<16x1xf32>
    %120 = vector.broadcast %119 : vector<16x1xf32> to vector<16x32xf32>
    %121 = arith.subf %115, %120 : vector<16x32xf32>
    %122 = arith.mulf %121, %121 : vector<16x32xf32>
    %cst_44 = arith.constant dense<0.000000e+00> : vector<16xf32>
    %123 = vector.multi_reduction <add>, %122, %cst_44 [1] : vector<16x32xf32> to vector<16xf32>
    %124 = vector.shape_cast %123 : vector<16xf32> to vector<16x1xf32>
    %cst_45 = arith.constant 3.200000e+01 : f32
    %125 = vector.broadcast %cst_45 : f32 to vector<16x1xf32>
    %126 = arith.divf %124, %125 : vector<16x1xf32>
    %127 = vector.broadcast %119 : vector<16x1xf32> to vector<16x32xf32>
    %128 = arith.subf %115, %127 : vector<16x32xf32>
    %cst_46 = arith.constant 9.99999974E-6 : f32
    %129 = vector.broadcast %cst_46 : f32 to vector<16x1xf32>
    %130 = arith.addf %126, %129 : vector<16x1xf32>
    %131 = math.rsqrt %130 : vector<16x1xf32>
    %132 = vector.broadcast %131 : vector<16x1xf32> to vector<16x32xf32>
    %133 = arith.mulf %128, %132 : vector<16x32xf32>
    %134 = vector.broadcast %4 : vector<1x32xf32> to vector<16x32xf32>
    %135 = arith.mulf %133, %134 : vector<16x32xf32>
    %136 = vector.broadcast %5 : vector<1x32xf32> to vector<16x32xf32>
    %137 = arith.addf %135, %136 : vector<16x32xf32>
    %c0_47 = arith.constant 0 : index
    %c0_48 = arith.constant 0 : index
    %138 = vector.load %arg7[%c0_47, %c0_48] : memref<32x64xf32, #tpu.memory_space<vmem>>, vector<32x64xf32>
    %cst_49 = arith.constant dense<0.000000e+00> : vector<16x64xf32>
    %139 = tpu.matmul %137, %138, %cst_49 {dimension_numbers = #tpu.dot_dimension_numbers<[1], [0], [0], [1], [0, 0, 1, 1], [], []>} : vector<16x32xf32>, vector<32x64xf32>, vector<16x64xf32> -> vector<16x64xf32>
    %c0_50 = arith.constant 0 : index
    %c0_51 = arith.constant 0 : index
    %140 = vector.load %arg8[%c0_50, %c0_51] : memref<1x64xf32, #tpu.memory_space<vmem>>, vector<1x64xf32>
    %141 = vector.broadcast %140 : vector<1x64xf32> to vector<16x64xf32>
    %142 = arith.addf %139, %141 : vector<16x64xf32>
    %cst_52 = arith.constant 0.000000e+00 : f32
    %143 = vector.broadcast %cst_52 : f32 to vector<16x64xf32>
    %144 = arith.maximumf %142, %143 : vector<16x64xf32>
    %c0_53 = arith.constant 0 : index
    %c0_54 = arith.constant 0 : index
    %145 = vector.load %arg9[%c0_53, %c0_54] : memref<64x32xf32, #tpu.memory_space<vmem>>, vector<64x32xf32>
    %cst_55 = arith.constant dense<0.000000e+00> : vector<16x32xf32>
    %146 = tpu.matmul %144, %145, %cst_55 {dimension_numbers = #tpu.dot_dimension_numbers<[1], [0], [0], [1], [0, 0, 1, 1], [], []>} : vector<16x64xf32>, vector<64x32xf32>, vector<16x32xf32> -> vector<16x32xf32>
    %147 = vector.broadcast %7 : vector<1x32xf32> to vector<16x32xf32>
    %148 = arith.addf %146, %147 : vector<16x32xf32>
    %149 = arith.addf %115, %148 : vector<16x32xf32>
    %150 = vector.shape_cast %149 : vector<16x32xf32> to vector<2x8x32xf32>
    %c0_56 = arith.constant 0 : index
    %c0_57 = arith.constant 0 : index
    %c0_58 = arith.constant 0 : index
    %151 = vector.load %arg10[%c0_56, %c0_57, %c0_58] : memref<2x8x32xf32, #tpu.memory_space<vmem>>, vector<2x8x32xf32>
    tpu.vector_store %arg10[%c0_56, %c0_57, %c0_58], %150 {strides = array<i32>} : memref<2x8x32xf32, #tpu.memory_space<vmem>>, vector<2x8x32xf32>,
    return
  }
  func.func @transform_0(%arg0: i32) -> (i32, i32, i32) {
    %c0_i32 = arith.constant 0 : i32
    %c0_i32_0 = arith.constant 0 : i32
    %c0_i32_1 = arith.constant 0 : i32
    return %arg0, %c0_i32, %c0_i32_0 : i32, i32, i32
  }
  func.func @transform_1(%arg0: i32) -> (i32, i32, i32) {
    %c0_i32 = arith.constant 0 : i32
    %c0_i32_0 = arith.constant 0 : i32
    %c0_i32_1 = arith.constant 0 : i32
    return %arg0, %c0_i32, %c0_i32_0 : i32, i32, i32
  }
  func.func @transform_2(%arg0: i32) -> (i32, i32) {
    %c0_i32 = arith.constant 0 : i32
    %c0_i32_0 = arith.constant 0 : i32
    %c0_i32_1 = arith.constant 0 : i32
    return %c0_i32, %c0_i32_0 : i32, i32
  }
  func.func @transform_3(%arg0: i32) -> (i32, i32) {
    %c0_i32 = arith.constant 0 : i32
    %c0_i32_0 = arith.constant 0 : i32
    %c0_i32_1 = arith.constant 0 : i32
    return %c0_i32, %c0_i32_0 : i32, i32
  }
  func.func @transform_4(%arg0: i32) -> (i32, i32) {
    %c0_i32 = arith.constant 0 : i32
    %c0_i32_0 = arith.constant 0 : i32
    %c0_i32_1 = arith.constant 0 : i32
    return %c0_i32, %c0_i32_0 : i32, i32
  }
  func.func @transform_5(%arg0: i32) -> (i32, i32, i32) {
    %c0_i32 = arith.constant 0 : i32
    %c0_i32_0 = arith.constant 0 : i32
    %c0_i32_1 = arith.constant 0 : i32
    %c0_i32_2 = arith.constant 0 : i32
    return %c0_i32, %c0_i32_0, %c0_i32_1 : i32, i32, i32
  }
  func.func @transform_6(%arg0: i32) -> (i32, i32) {
    %c0_i32 = arith.constant 0 : i32
    %c0_i32_0 = arith.constant 0 : i32
    %c0_i32_1 = arith.constant 0 : i32
    return %c0_i32, %c0_i32_0 : i32, i32
  }
  func.func @transform_7(%arg0: i32) -> (i32, i32) {
    %c0_i32 = arith.constant 0 : i32
    %c0_i32_0 = arith.constant 0 : i32
    %c0_i32_1 = arith.constant 0 : i32
    return %c0_i32, %c0_i32_0 : i32, i32
  }
  func.func @transform_8(%arg0: i32) -> (i32, i32) {
    %c0_i32 = arith.constant 0 : i32
    %c0_i32_0 = arith.constant 0 : i32
    %c0_i32_1 = arith.constant 0 : i32
    return %c0_i32, %c0_i32_0 : i32, i32
  }
  func.func @transform_9(%arg0: i32) -> (i32, i32, i32) {
    %c0_i32 = arith.constant 0 : i32
    %c0_i32_0 = arith.constant 0 : i32
    %c0_i32_1 = arith.constant 0 : i32
    return %arg0, %c0_i32, %c0_i32_0 : i32, i32, i32
  }
}

</mosaic_0001>

<bundles_post_ra>
// kernel: tpu_custom_call.1
= control target key start
LH: loop header
LB: loop body
LE: loop exit
PB: predicated region body
PF: predicated region fallthrough
CT: control target
= control target key end

     0   :  { %14 = vsyncpa [#allocation3], 0  ;;  %s2900_s0 = inlined_call_operand.hbm [shape: f32[2,8,32], index: 0, kind: input, shape index: {}]   ;;  %s2901_s1 = inlined_call_operand.hbm [shape: f32[2,1,8], index: 1, kind: input, shape index: {}]   ;;  %s2902_s2 = inlined_call_operand.hbm [shape: f32[6,32], index: 2, kind: input, shape index: {}]   ;;  %s2903_s3 = inlined_call_operand.vmem [shape: f32[32,96], index: 3, kind: input, shape index: {}]   ;;  %s2904_s4 = inlined_call_operand.vmem [shape: f32[1,96], index: 4, kind: input, shape index: {}]   ;;  %s2905_s5 = inlined_call_operand.vmem [shape: f32[4,8,32], index: 5, kind: input, shape index: {}]   ;;  %s2906_s6 = inlined_call_operand.vmem [shape: f32[32,64], index: 6, kind: input, shape index: {}]   ;;  %s2907_s7 = inlined_call_operand.vmem [shape: f32[1,64], index: 7, kind: input, shape index: {}]   ;;  %s2908_s8 = inlined_call_operand.vmem [shape: f32[64,32], index: 8, kind: input, shape index: {}]   ;;  %s2909_s9 = inlined_call_operand.hbm [shape: f32[2,8,32], index: 9, kind: output, shape index: {}]  }
   0x1   :  { %15 = vsyncpa [#allocation6], 0 }
   0x2   :  { %16 = vsyncpa [#allocation4], 0  ;;  %s2551_s30 = smov [#allocation5]  }
   0x3   :  { %s34_s10 = sshll.u32 %s2551_s30, 4  ;;  %s35_s10 = int_to_ptr.vmem [resolvable:$true] %s34_s10 }
   0x4   :  { %s2473_s11 = scalar_lea.vmem %s35_s10, 32  ;;  %p2478_p1 = scmp.lt.s32.totalorder %s35_s10, %s35_s10 }
   0x5   :  { %p2474_p0 = scmp.ne.s32.totalorder %s35_s10, %s2473_s11  ;;  %p2479_p2 = scmp.lt.s32.totalorder %s2473_s11, %s2473_s11 }
   0x7   :  { %p2480_p3 = por %p2479_p2, %p2478_p1 }
   0x9   :  { %p2481_p4 = pnand %p2480_p3, %p2474_p0 }
   0xb   :  { %2484 = shalt.err (!%p2481_p4)
}
   0xc   :  { %s2552_s12 = smov 16   ;;  %s2553_s13 = smov 1  }
   0xd   :  { %40 = dma.hbm_to_vmem [thread:$0]  %s2901_s1, 32, %s35_s10, [#allocation6], %s2552_s12, %s2552_s12, %s2553_s13  }
   0xe   :  { %s2554_s16 = smov [#allocation2]  }
   0xf   :  { %s22_s17 = sshll.u32 %s2554_s16, 4  ;;  %s23_s17 = int_to_ptr.vmem [resolvable:$true] %s22_s17 }
  0x10   :  { %s2493_s18 = scalar_lea.vmem %s23_s17, 256  ;;  %p2498_p6 = scmp.lt.s32.totalorder %s23_s17, %s23_s17 }
  0x11   :  { %p2494_p5 = scmp.ne.s32.totalorder %s23_s17, %s2493_s18  ;;  %p2499_p7 = scmp.lt.s32.totalorder %s2493_s18, %s2493_s18 }
  0x13   :  { %p2500_p8 = por %p2499_p7, %p2498_p6 }
  0x15   :  { %p2501_p9 = pnand %p2500_p8, %p2494_p5 }
  0x17   :  { %2504 = shalt.err (!%p2501_p9)
}
  0x18   :  { %s2555_s19 = smov 128   ;;  %s2556_s20 = smov 8  }
  0x19   :  { %28 = dma.hbm_to_vmem [thread:$0]  %s2900_s0, 256, %s23_s17, [#allocation3], %s2555_s19, %s2555_s19, %s2556_s20  }
  0x1a   :  { %s2557_s1 = smov [#allocation7]  }
  0x1b   :  { %s47_s23 = sshll.u32 %s2557_s1, 4  ;;  %s48_s23 = int_to_ptr.vmem [resolvable:$true] %s47_s23 }
  0x1c   :  { %s2513_s24 = scalar_lea.vmem %s48_s23, 128  ;;  %p2518_p11 = scmp.lt.s32.totalorder %s48_s23, %s48_s23 }
  0x1d   :  { %p2514_p10 = scmp.ne.s32.totalorder %s48_s23, %s2513_s24  ;;  %p2519_p12 = scmp.lt.s32.totalorder %s2513_s24, %s2513_s24 }
  0x1f   :  { %p2520_p13 = por %p2519_p12, %p2518_p11 }
  0x21   :  { %p2521_p0 = pnand %p2520_p13, %p2514_p10 }
  0x23   :  { %2524 = shalt.err (!%p2521_p0)
}
  0x24   :  { %50 = dma.hbm_to_vmem [thread:$0]  %s2902_s2, 128, %s48_s23, [#allocation6]  }
  0x25   :  { %2545 = dma.done.wait [#allocation3], 256  }
  0x26   :  { %2546 = vsyncadd [#allocation3], 4294967040 }
  0x27   :  { %2547 = dma.done.wait [#allocation6], 160  }
  0x28   :  { %2548 = vsyncadd [#allocation6], 4294967136  ;;  %vm80_vm0 = vcmask 261120   ;;  %v2628_v0 = vld [vmem:[#allocation2] sm:$0xff]  ;;  %v2630_v1 = vld [vmem:[#allocation2 + $0x8] sm:$0xff]  ;;  %v2558_v35 = vmov 0.0  }
  0x29   :  { %v81_v2 = vsel %vm80_vm0, %v2628_v0, 0.0  ;;  %v84_v3 = vsel %vm80_vm0, %v2630_v1, 0.0  ;;  %v123_v14 = vld [vmem:[%s2903_s3 + $0x18] sm:$0xff]  ;;  %v122_v15 = vld [vmem:[%s2903_s3 + $0x10] sm:$0xff]  ;;  %v121_v16 = vld [vmem:[%s2903_s3 + $0x8] sm:$0xff]  ;;  %2285 = vmatprep.subr.mxu1 %v2558_v35  ;;  %vm2559_vm1 = vmmov 0  }
  0x2a   :  { %82 = vadd.xlane.f32.xlu0 %v81_v2  ;;  %2269 = vmatprep.subr.mxu0 %v123_v14  ;;  %v120_v17 = vld [vmem:[%s2903_s3] sm:$0xff]  ;;  %v2152_v25 = vld [vmem:[#allocation7] ss:$0 sm:$0xff]  ;;  %v2153_v27 = vld [vmem:[#allocation7 + $0x1] ss:$0 sm:$0xff]  ;;  %s2560_s13 = smov 120  }
  0x2b   :  { %2270 = vmatpush3.msra.mxu0 %v123_v14  ;;  %v2154_v34 = vld [vmem:[%s2904_s4] ss:$0 sm:$0xff]  ;;  %2287 = vmatprep.mubr.msk.f32.mxu1 %vm2559_vm1, %v2558_v35  ;;  %s2561_s4 = smov 112   ;;  %s2562_s14 = smov 104   ;;  %vm230_vm2 = vcmask 64512   ;;  %vm2048_vm3 = vcmask 523264  }
  0x2c   :  { %2271 = vmatprep.subr.mxu0 %v122_v15  ;;  %s2563_s15 = smov 96   ;;  %v2173_v55 = vld [vmem:[#allocation5] ss:$0 sm:$0xff]  ;;  %v2174_v61 = vld [vmem:[#allocation5 + $0x1] ss:$0 sm:$0xff]  ;;  %s2564_s16 = smov 64  }
  0x2d   :  { %2272 = vmatpush3.msra.mxu0 %v122_v15 }
  0x2e   :  { %85 = vadd.xlane.f32.xlu0 %v84_v3  ;;  %2273 = vmatprep.subr.mxu0 %v121_v16 }
  0x2f   :  { %2274 = vmatpush3.msra.mxu0 %v121_v16 }
  0x30   :  { %2275 = vmatprep.subr.mxu0 %v120_v17 }
  0x31   :  { %2276 = vmatpush3.msra.mxu0 %v120_v17 }
  0x32   :  { %2280 = vmatprep.subr.mxu0 %v2558_v35 }
  0xb3   :  { %v83_v4 = vpop.xlane.xlu0 %82 }
  0xb4   :  { %v88_v5 = vmul.f32 0.03125, %v83_v4 }
  0xb6   :  { %v90_v6 = vsub.f32 %v2628_v0, %v88_v5 }
  0xb7   :  { %v86_v7 = vpop.xlane.xlu0 %85 }
  0xb8   :  { %v89_v8 = vmul.f32 0.03125, %v86_v7  ;;  %v92_v9 = vmul.f32 %v90_v6, %v90_v6 }
  0xba   :  { %v91_v10 = vsub.f32 %v2630_v1, %v89_v8  ;;  %v94_v11 = vsel %vm80_vm0, %v92_v9, 0.0 }
  0xbb   :  { %95 = vadd.xlane.f32.xlu1 %v94_v11 }
  0xbc   :  { %v93_v12 = vmul.f32 %v91_v10, %v91_v10 }
  0xbe   :  { %v97_v13 = vsel %vm80_vm0, %v93_v12, 0.0 }
  0xbf   :  { %98 = vadd.xlane.f32.xlu1 %v97_v13 }
 0x144   :  { %v96_v18 = vpop.xlane.xlu1 %95 }
 0x145   :  { %v100_v19 = vmul.f32 0.03125, %v96_v18 }
 0x147   :  { %v102_v20 = vadd.f32 1e-05, %v100_v19 }
 0x148   :  { %v99_v21 = vpop.xlane.xlu1 %98 }
 0x149   :  { %2425 = vrsqrt.f32 %v102_v20  ;;  %v101_v22 = vmul.f32 0.03125, %v99_v21 }
 0x14b   :  { %v103_v23 = vadd.f32 1e-05, %v101_v22 }
 0x14d   :  { %2427 = vrsqrt.f32 %v103_v23 }
 0x156   :  { %v2426_v24 = vpop.eup %2425 }
 0x157   :  { %v106_v26 = vmul.f32 %v2426_v24, %v90_v6 }
 0x159   :  { %v112_v28 = vmul.f32 %v2152_v25, %v106_v26 }
 0x15a   :  { %v2428_v29 = vpop.eup %2427 }
 0x15b   :  { %v107_v30 = vmul.f32 %v2428_v29, %v91_v10  ;;  %v118_v31 = vadd.f32 %v2153_v27, %v112_v28 }
 0x15d   :  { %v113_v32 = vmul.f32 %v2152_v25, %v107_v30  ;;  %2277 = vmatprep.mubr.msk.f32.mxu0 %vm80_vm0, %v118_v31 }
 0x15f   :  { %v119_v33 = vadd.f32 %v2153_v27, %v113_v32 }
 0x161   :  { %2278 = vmatmul.mubr.msk.f32.vlgmr.msra.gmra.mxu0 %vm80_vm0, %v119_v33 }
 0x162   :  { %2282 = vmatprep.mubr.msk.f32.mxu0 %vm2559_vm1, %v2558_v35 }
 0x221   :  { %v2279_v36 = vpop.f32.mrf.mxu0 }
 0x222   :  { %v2659_v37 = vadd.f32 %v2279_v36, %v2154_v34 }
 0x223   :  { %v203_v38 = vpop.f32.mrf.mxu0 }
 0x224   :  { %v2665_v39 = vadd.f32 %v2154_v34, %v203_v38  ;;  %216 = vrot.lane.b32.xlu1 %v2659_v37, %s2560_s13 }
 0x226   :  { %214 = vrot.lane.b32.xlu0 %v2665_v39, %s2560_s13 }
 0x228   :  { %218 = vrot.lane.b32.xlu1 %v2665_v39, %s2561_s4 }
 0x22a   :  { %222 = vrot.lane.b32.xlu0 %v2665_v39, %s2562_s14 }
 0x22c   :  { %220 = vrot.lane.b32.xlu1 %v2659_v37, %s2561_s4 }
 0x22e   :  { %228 = vrot.lane.b32.xlu0 %v2665_v39, %s2563_s15 }
 0x230   :  { %224 = vrot.lane.b32.xlu1 %v2659_v37, %s2562_s14 }
 0x234   :  { %305 = vrot.lane.b32.xlu1 %v2659_v37, %s2563_s15 }
 0x296   :  { %v2675_v40 = vpop.permute.xlu1 %216 }
 0x297   :  { %457 = vrot.lane.b32.xlu1 %v2675_v40, %s2563_s15 }
 0x298   :  { %v2678_v41 = vpop.permute.xlu0 %214 }
 0x299   :  { %381 = vrot.lane.b32.xlu0 %v2678_v41, %s2563_s15 }
 0x29a   :  { %v2681_v42 = vpop.permute.xlu1 %218 }
 0x29c   :  { %v2683_v43 = vpop.permute.xlu0 %222 }
 0x29d   :  { %533 = vrot.lane.b32.xlu0 %v2681_v42, %s2563_s15 }
 0x29e   :  { %v2686_v44 = vpop.permute.xlu1 %220 }
 0x29f   :  { %609 = vrot.lane.b32.xlu1 %v2686_v44, %s2563_s15 }
 0x2a0   :  { %v229_v45 = vpop.permute.xlu0 %228 }
 0x2a1   :  { %685 = vrot.lane.b32.xlu0 %v2683_v43, %s2563_s15  ;;  %2281 = vmatpush3.xpose.msk.msra.mxu0 %vm230_vm2, %v229_v45 }
 0x2a2   :  { %v2691_v46 = vpop.permute.xlu1 %224  ;;  %2290 = vmatprep.subr.mxu0 %v2558_v35 }
 0x2a3   :  { %761 = vrot.lane.b32.xlu1 %v2691_v46, %s2563_s15 }
 0x2a4   :  { %2283 = vmatmul.mubr.msk.f32.vlgmr.msra.gmra.mxu0 %vm230_vm2, %v2665_v39 }
 0x2a5   :  { %2292 = vmatprep.mubr.msk.f32.mxu0 %vm2559_vm1, %v2558_v35 }
 0x2a6   :  { %v306_v47 = vpop.permute.xlu1 %305 }
 0x2a7   :  { %2286 = vmatpush3.xpose.msk.msra.mxu1 %vm230_vm2, %v306_v47 }
 0x2a8   :  { %2295 = vmatprep.subr.mxu1 %v2558_v35 }
 0x2aa   :  { %2288 = vmatmul.mubr.msk.f32.vlgmr.msra.gmra.mxu1 %vm230_vm2, %v2659_v37 }
 0x2ab   :  { %2297 = vmatprep.mubr.msk.f32.mxu1 %vm2559_vm1, %v2558_v35 }
 0x309   :  { %v458_v48 = vpop.permute.xlu1 %457 }
 0x30a   :  { %2296 = vmatpush3.xpose.msk.msra.mxu1 %vm230_vm2, %v458_v48 }
 0x30b   :  { %v382_v49 = vpop.permute.xlu0 %381  ;;  %2305 = vmatprep.subr.mxu1 %v2558_v35 }
 0x30c   :  { %2291 = vmatpush3.xpose.msk.msra.mxu0 %vm230_vm2, %v382_v49 }
 0x30d   :  { %2298 = vmatmul.mubr.msk.f32.vlgmr.msra.gmra.mxu1 %vm230_vm2, %v2675_v40  ;;  %2300 = vmatprep.subr.mxu0 %v2558_v35 }
 0x30e   :  { %2307 = vmatprep.mubr.msk.f32.mxu1 %vm2559_vm1, %v2558_v35 }
 0x30f   :  { %2293 = vmatmul.mubr.msk.f32.vlgmr.msra.gmra.mxu0 %vm230_vm2, %v2678_v41  ;;  %v534_v50 = vpop.permute.xlu0 %533 }
 0x310   :  { %2301 = vmatpush3.xpose.msk.msra.mxu0 %vm230_vm2, %v534_v50  ;;  %2302 = vmatprep.mubr.msk.f32.mxu0 %vm2559_vm1, %v2558_v35 }
 0x311   :  { %v610_v51 = vpop.permute.xlu1 %609  ;;  %2310 = vmatprep.subr.mxu0 %v2558_v35 }
 0x312   :  { %2306 = vmatpush3.xpose.msk.msra.mxu1 %vm230_vm2, %v610_v51 }
 0x313   :  { %2303 = vmatmul.mubr.msk.f32.vlgmr.msra.gmra.mxu0 %vm230_vm2, %v2681_v42  ;;  %v686_v52 = vpop.permute.xlu0 %685  ;;  %2315 = vmatprep.subr.mxu1 %v2558_v35 }
 0x314   :  { %2311 = vmatpush3.xpose.msk.msra.mxu0 %vm230_vm2, %v686_v52  ;;  %2312 = vmatprep.mubr.msk.f32.mxu0 %vm2559_vm1, %v2558_v35 }
 0x315   :  { %2308 = vmatmul.mubr.msk.f32.vlgmr.msra.gmra.mxu1 %vm230_vm2, %v2686_v44  ;;  %v762_v53 = vpop.permute.xlu1 %761  ;;  %2320 = vmatprep.subr.mxu0 %v2558_v35 }
 0x316   :  { %2316 = vmatpush3.xpose.msk.msra.mxu1 %vm230_vm2, %v762_v53  ;;  %2317 = vmatprep.mubr.msk.f32.mxu1 %vm2559_vm1, %v2558_v35 }
 0x317   :  { %2313 = vmatmul.mubr.msk.f32.vlgmr.msra.gmra.mxu0 %vm230_vm2, %v2683_v43  ;;  %2325 = vmatprep.subr.mxu1 %v2558_v35 }
 0x318   :  { %2322 = vmatprep.mubr.msk.f32.mxu0 %vm2559_vm1, %v2558_v35 }
 0x319   :  { %2318 = vmatmul.mubr.msk.f32.vlgmr.msra.gmra.mxu1 %vm230_vm2, %v2691_v46 }
 0x31a   :  { %2327 = vmatprep.mubr.msk.f32.mxu1 %vm2559_vm1, %v2558_v35 }
 0x364   :  { %v301_v54 = vpop.f32.mrf.mxu0 }
 0x365   :  { %v837_v56 = vmul.f32 0.35355338, %v301_v54 }
 0x366   :  { %v2284_v57 = vpop.f32.mrf.mxu0 }
 0x367   :  { %v857_v58 = vadd.f32 %v2173_v55, %v837_v56 }
 0x369   :  { %v865_v59 = vsel %vm230_vm2, %v857_v58, -inf }
 0x36a   :  { %v377_v60 = vpop.f32.mrf.mxu1  ;;  %866 = vmax.xlane.f32.xlu0 %v865_v59 }
 0x36b   :  { %v838_v62 = vmul.f32 0.35355338, %v377_v60 }
 0x36c   :  { %v2289_v63 = vpop.f32.mrf.mxu1 }
 0x36d   :  { %v858_v2 = vadd.f32 %v2174_v61, %v838_v62 }
 0x36f   :  { %v868_v3 = vsel %vm230_vm2, %v858_v2, -inf }
 0x370   :  { %869 = vmax.xlane.f32.xlu1 %v868_v3 }
 0x3cd   :  { %v529_v4 = vpop.f32.mrf.mxu1 }
 0x3ce   :  { %v840_v5 = vmul.f32 0.35355338, %v529_v4 }
 0x3cf   :  { %v453_v6 = vpop.f32.mrf.mxu0  ;;  %v2299_v7 = vpop.f32.mrf.mxu1 }
 0x3d0   :  { %v839_v8 = vmul.f32 0.35355338, %v453_v6  ;;  %v860_v9 = vadd.f32 %v2174_v61, %v840_v5 }
 0x3d1   :  { %v2294_v10 = vpop.f32.mrf.mxu0 }
 0x3d2   :  { %v874_v11 = vsel %vm230_vm2, %v860_v9, -inf  ;;  %v859_v12 = vadd.f32 %v2173_v55, %v839_v8 }
 0x3d3   :  { %875 = vmax.xlane.f32.xlu0 %v874_v11  ;;  %v605_v13 = vpop.f32.mrf.mxu0 }
 0x3d4   :  { %v841_v14 = vmul.f32 0.35355338, %v605_v13  ;;  %v871_v18 = vsel %vm230_vm2, %v859_v12, -inf }
 0x3d5   :  { %v2304_v15 = vpop.f32.mrf.mxu0  ;;  %v681_v16 = vpop.f32.mrf.mxu1 }
 0x3d6   :  { %v842_v17 = vmul.f32 0.35355338, %v681_v16  ;;  %v861_v19 = vadd.f32 %v2173_v55, %v841_v14 }
 0x3d7   :  { %v2309_v20 = vpop.f32.mrf.mxu1  ;;  %872 = vmax.xlane.f32.xlu0 %v871_v18  ;;  %v757_v21 = vpop.f32.mrf.mxu0 }
 0x3d8   :  { %v843_v22 = vmul.f32 0.35355338, %v757_v21  ;;  %v862_v23 = vadd.f32 %v2174_v61, %v842_v17  ;;  %v877_v28 = vsel %vm230_vm2, %v861_v19, -inf }
 0x3d9   :  { %v2314_v24 = vpop.f32.mrf.mxu0  ;;  %v833_v25 = vpop.f32.mrf.mxu1 }
 0x3da   :  { %v844_v26 = vmul.f32 0.35355338, %v833_v25  ;;  %v880_v27 = vsel %vm230_vm2, %v862_v23, -inf  ;;  %v863_v29 = vadd.f32 %v2173_v55, %v843_v22 }
 0x3db   :  { %881 = vmax.xlane.f32.xlu1 %v880_v27  ;;  %v2319_v30 = vpop.f32.mrf.mxu1  ;;  %878 = vmax.xlane.f32.xlu0 %v877_v28 }
 0x3dc   :  { %v864_v31 = vadd.f32 %v2174_v61, %v844_v26  ;;  %v883_v33 = vsel %vm230_vm2, %v863_v29, -inf }
 0x3de   :  { %v886_v32 = vsel %vm230_vm2, %v864_v31, -inf }
 0x3df   :  { %887 = vmax.xlane.f32.xlu1 %v886_v32  ;;  %884 = vmax.xlane.f32.xlu0 %v883_v33 }
 0x3f0   :  { %1029 = vrot.lane.b32.xlu1 %v2659_v37, %s2564_s16 }
 0x3f3   :  { %v867_v34 = vpop.xlane.xlu0 %866 }
 0x3f4   :  { %1105 = vrot.lane.b32.xlu1 %v2678_v41, %s2564_s16  ;;  %v889_v36 = vsub.f32 %v857_v58, %v867_v34 }
 0x3f5   :  { %953 = vrot.lane.b32.xlu0 %v2665_v39, %s2564_s16 }
 0x3f6   :  { %v897_v38 = vmul.f32 1.442695, %v889_v36 }
 0x3f8   :  { %1181 = vrot.lane.b32.xlu1 %v2675_v40, %s2564_s16  ;;  %2429 = vpow2.f32 %v897_v38 }
 0x3f9   :  { %1257 = vrot.lane.b32.xlu0 %v2681_v42, %s2564_s16  ;;  %v870_v45 = vpop.xlane.xlu1 %869 }
 0x3fa   :  { %v890_v37 = vsub.f32 %v858_v2, %v870_v45 }
 0x3fc   :  { %1333 = vrot.lane.b32.xlu1 %v2686_v44, %s2564_s16  ;;  %v899_v47 = vmul.f32 1.442695, %v890_v37 }
 0x3fe   :  { %2431 = vpow2.f32 %v899_v47 }
 0x405   :  { %v2761_v41 = vpop.eup %2429 }
 0x406   :  { %v913_v39 = vsel %vm230_vm2, %v2761_v41, 0.0 }
 0x40b   :  { %v2765_v40 = vpop.eup %2431 }
 0x40c   :  { %v916_v42 = vsel %vm230_vm2, %v2765_v40, 0.0 }
 0x418   :  { %914 = vadd.xlane.f32.xlu0 %v913_v39 }
 0x420   :  { %917 = vadd.xlane.f32.xlu1 %v916_v42 }
 0x45c   :  { %v876_v44 = vpop.xlane.xlu0 %875 }
 0x45d   :  { %v892_v48 = vsub.f32 %v860_v9, %v876_v44 }
 0x45f   :  { %v903_v49 = vmul.f32 1.442695, %v892_v48 }
 0x460   :  { %v873_v50 = vpop.xlane.xlu0 %872 }
 0x461   :  { %2433 = vpow2.f32 %v903_v49  ;;  %v891_v51 = vsub.f32 %v859_v12, %v873_v50  ;;  %v2183_v49 = vld [vmem:[%s2905_s5 + $0x8] sm:$0xff]  ;;  %v2188_v50 = vld [vmem:[%s2905_s5 + $0x10] sm:$0xff] }
 0x463   :  { %v901_v52 = vmul.f32 1.442695, %v891_v51 }
 0x464   :  { %v882_v53 = vpop.xlane.xlu1 %881  ;;  %v879_v54 = vpop.xlane.xlu0 %878 }
 0x465   :  { %2435 = vpow2.f32 %v901_v52  ;;  %v894_v55 = vsub.f32 %v862_v23, %v882_v53  ;;  %v893_v56 = vsub.f32 %v861_v19, %v879_v54 }
 0x467   :  { %v907_v57 = vmul.f32 1.442695, %v894_v55  ;;  %v905_v58 = vmul.f32 1.442695, %v893_v56 }
 0x468   :  { %v888_v59 = vpop.xlane.xlu1 %887  ;;  %v885_v60 = vpop.xlane.xlu0 %884 }
 0x469   :  { %2437 = vpow2.f32 %v907_v57  ;;  %v896_v61 = vsub.f32 %v864_v31, %v888_v59  ;;  %v895_v62 = vsub.f32 %v863_v29, %v885_v60 }
 0x46a   :  { %2439 = vpow2.f32 %v905_v58 }
 0x46b   :  { %v911_v63 = vmul.f32 1.442695, %v896_v61  ;;  %v909_v2 = vmul.f32 1.442695, %v895_v62 }
 0x46c   :  { %v1030_v3 = vpop.permute.xlu1 %1029  ;;  %v954_v4 = vpop.permute.xlu0 %953 }
 0x46d   :  { %2441 = vpow2.f32 %v911_v63  ;;  %2321 = vmatpush3.msra.mxu0 %v954_v4  ;;  %2326 = vmatpush3.msra.mxu1 %v1030_v3 }
 0x46e   :  { %v2434_v5 = vpop.eup %2433  ;;  %2443 = vpow2.f32 %v909_v2  ;;  %2330 = vmatprep.subr.mxu0 %v2558_v35  ;;  %2335 = vmatprep.subr.mxu1 %v2558_v35 }
 0x46f   :  { %v922_v6 = vsel %vm230_vm2, %v2434_v5, 0.0 }
 0x470   :  { %923 = vadd.xlane.f32.xlu1 %v922_v6  ;;  %v1106_v17 = vpop.permute.xlu1 %1105  ;;  %v1258_v18 = vpop.permute.xlu0 %1257 }
 0x472   :  { %v2436_v7 = vpop.eup %2435 }
 0x473   :  { %v919_v8 = vsel %vm230_vm2, %v2436_v7, 0.0 }
 0x474   :  { %920 = vadd.xlane.f32.xlu0 %v919_v8  ;;  %v1182_v19 = vpop.permute.xlu1 %1181 }
 0x476   :  { %v2438_v9 = vpop.eup %2437 }
 0x477   :  { %v2440_v10 = vpop.eup %2439  ;;  %v928_v11 = vsel %vm230_vm2, %v2438_v9, 0.0 }
 0x478   :  { %929 = vadd.xlane.f32.xlu1 %v928_v11  ;;  %v925_v12 = vsel %vm230_vm2, %v2440_v10, 0.0  ;;  %v1334_v21 = vpop.permute.xlu1 %1333 }
 0x479   :  { %926 = vadd.xlane.f32.xlu0 %v925_v12 }
 0x47a   :  { %v2775_v13 = vpop.eup %2441 }
 0x47b   :  { %v2777_v14 = vpop.eup %2443  ;;  %v934_v15 = vsel %vm230_vm2, %v2775_v13, 0.0 }
 0x47c   :  { %935 = vadd.xlane.f32.xlu1 %v934_v15  ;;  %v931_v16 = vsel %vm230_vm2, %v2777_v14, 0.0 }
 0x47d   :  { %932 = vadd.xlane.f32.xlu0 %v931_v16 }
 0x48d   :  { %1485 = vrot.lane.b32.xlu1 %v2691_v46, %s2564_s16 }
 0x493   :  { %1409 = vrot.lane.b32.xlu0 %v2683_v43, %s2564_s16 }
 0x4a1   :  { %v915_v20 = vpop.xlane.xlu0 %914 }
 0x4a2   :  { %2445 = vrcp.f32 %v915_v20 }
 0x4a9   :  { %v918_v22 = vpop.xlane.xlu1 %917 }
 0x4aa   :  { %2447 = vrcp.f32 %v918_v22 }
 0x4af   :  { %v2446_v23 = vpop.eup %2445 }
 0x4b0   :  { %v945_v24 = vmul.f32 %v2446_v23, %v2761_v41  ;;  %v1561_v41 = vld [vmem:[%s2905_s5] sm:$0xff] }
 0x4b2   :  { %2323 = vmatmul.mubr.msk.f32.vlgmr.msra.gmra.mxu0 %vm230_vm2, %v945_v24 }
 0x4b3   :  { %2331 = vmatpush3.msra.mxu0 %v1106_v17  ;;  %2332 = vmatprep.mubr.msk.f32.mxu0 %vm2559_vm1, %v2558_v35  ;;  %v2194_v17 = vld [vmem:[#allocation7 + $0x4] ss:$0 sm:$0xff] }
 0x4b4   :  { %2340 = vmatprep.subr.mxu0 %v2558_v35 }
 0x4b7   :  { %v2448_v43 = vpop.eup %2447 }
 0x4b8   :  { %v946_v46 = vmul.f32 %v2448_v43, %v2765_v40 }
 0x4ba   :  { %2328 = vmatmul.mubr.msk.f32.vlgmr.msra.gmra.mxu1 %vm230_vm2, %v946_v46 }
 0x4bb   :  { %2336 = vmatpush3.msra.mxu1 %v1182_v19  ;;  %2337 = vmatprep.mubr.msk.f32.mxu1 %vm2559_vm1, %v2558_v35 }
 0x4bc   :  { %2345 = vmatprep.subr.mxu1 %v2558_v35 }
 0x4f9   :  { %v924_v25 = vpop.xlane.xlu1 %923 }
 0x4fa   :  { %2449 = vrcp.f32 %v924_v25 }
 0x4fd   :  { %v921_v26 = vpop.xlane.xlu0 %920 }
 0x4fe   :  { %2451 = vrcp.f32 %v921_v26 }
 0x501   :  { %v930_v27 = vpop.xlane.xlu1 %929 }
 0x502   :  { %2453 = vrcp.f32 %v930_v27  ;;  %v927_v28 = vpop.xlane.xlu0 %926 }
 0x503   :  { %2455 = vrcp.f32 %v927_v28 }
 0x505   :  { %v936_v29 = vpop.xlane.xlu1 %935 }
 0x506   :  { %2457 = vrcp.f32 %v936_v29  ;;  %v933_v30 = vpop.xlane.xlu0 %932 }
 0x507   :  { %v2450_v31 = vpop.eup %2449  ;;  %2459 = vrcp.f32 %v933_v30 }
 0x508   :  { %v948_v32 = vmul.f32 %v2450_v31, %v2434_v5 }
 0x509   :  { %v1486_v47 = vpop.permute.xlu1 %1485 }
 0x50a   :  { %2338 = vmatmul.mubr.msk.f32.vlgmr.msra.gmra.mxu1 %vm230_vm2, %v948_v32  ;;  %v1410_v40 = vpop.permute.xlu0 %1409  ;;  %v1945_v32 = vld [vmem:[%s2906_s6 + $0x18] sm:$0xff] }
 0x50b   :  { %v2452_v33 = vpop.eup %2451  ;;  %2346 = vmatpush3.msra.mxu1 %v1334_v21  ;;  %2347 = vmatprep.mubr.msk.f32.mxu1 %vm2559_vm1, %v2558_v35 }
 0x50c   :  { %v947_v34 = vmul.f32 %v2452_v33, %v2436_v7  ;;  %2355 = vmatprep.subr.mxu1 %v2558_v35  ;;  %v1944_v33 = vld [vmem:[%s2906_s6 + $0x10] sm:$0xff] }
 0x50e   :  { %2333 = vmatmul.mubr.msk.f32.vlgmr.msra.gmra.mxu0 %vm230_vm2, %v947_v34  ;;  %v1943_v34 = vld [vmem:[%s2906_s6 + $0x8] sm:$0xff] }
 0x50f   :  { %v2454_v36 = vpop.eup %2453  ;;  %2341 = vmatpush3.msra.mxu0 %v1258_v18  ;;  %2342 = vmatprep.mubr.msk.f32.mxu0 %vm2559_vm1, %v2558_v35 }
 0x510   :  { %v2456_v38 = vpop.eup %2455  ;;  %2350 = vmatprep.subr.mxu0 %v2558_v35  ;;  %v950_v45 = vmul.f32 %v2454_v36, %v2438_v9  ;;  %v1942_v36 = vld [vmem:[%s2906_s6] sm:$0xff] }
 0x511   :  { %v949_v37 = vmul.f32 %v2456_v38, %v2440_v10  ;;  %v2043_v38 = vld [vmem:[%s2908_s8 + $0x38] sm:$0xff] }
 0x512   :  { %2348 = vmatmul.mubr.msk.f32.vlgmr.msra.gmra.mxu1 %vm230_vm2, %v950_v45  ;;  %v2042_v45 = vld [vmem:[%s2908_s8 + $0x30] sm:$0xff] }
 0x513   :  { %v2458_v39 = vpop.eup %2457  ;;  %2343 = vmatmul.mubr.msk.f32.vlgmr.msra.gmra.mxu0 %vm230_vm2, %v949_v37  ;;  %2356 = vmatpush3.msra.mxu1 %v1486_v47  ;;  %v2041_v37 = vld [vmem:[%s2908_s8 + $0x28] sm:$0xff]  ;;  %v2040_v47 = vld [vmem:[%s2908_s8 + $0x20] sm:$0xff] }
 0x514   :  { %v2460_v42 = vpop.eup %2459  ;;  %2351 = vmatpush3.msra.mxu0 %v1410_v40  ;;  %2352 = vmatprep.mubr.msk.f32.mxu0 %vm2559_vm1, %v2558_v35  ;;  %v952_v44 = vmul.f32 %v2458_v39, %v2775_v13 }
 0x515   :  { %2357 = vmatprep.mubr.msk.f32.mxu1 %vm2559_vm1, %v2558_v35  ;;  %v951_v48 = vmul.f32 %v2460_v42, %v2777_v14  ;;  %2365 = vmatprep.subr.mxu1 %v1561_v41  ;;  %v2191_v35 = vld [vmem:[%s2905_s5 + $0x18] sm:$0xff] }
 0x516   :  { %2358 = vmatmul.mubr.msk.f32.vlgmr.msra.gmra.mxu1 %vm230_vm2, %v952_v44  ;;  %2360 = vmatprep.subr.mxu0 %v2183_v49 }
 0x517   :  { %2353 = vmatmul.mubr.msk.f32.vlgmr.msra.gmra.mxu0 %vm230_vm2, %v951_v48  ;;  %2366 = vmatpush3.msra.mxu1 %v1561_v41 }
 0x518   :  { %2361 = vmatpush3.msra.mxu0 %v2183_v49  ;;  %2375 = vmatprep.subr.mxu1 %v2191_v35 }
 0x519   :  { %2370 = vmatprep.subr.mxu0 %v2188_v50 }
 0x572   :  { %v1025_v51 = vpop.f32.mrf.mxu0 }
 0x573   :  { %2367 = vmatprep.mubr.msk.f32.mxu1 %vm230_vm2, %v1025_v51  ;;  %v2196_v51 = vld [vmem:[#allocation7 + $0x3] ss:$0 sm:$0xff] }
 0x574   :  { %v2324_v52 = vpop.f32.mrf.mxu0 }
 0x57a   :  { %v1101_v53 = vpop.f32.mrf.mxu1 }
 0x57b   :  { %2368 = vmatmul.mubr.msk.f32.vlgmr.msra.gmra.mxu1 %vm230_vm2, %v1101_v53 }
 0x57c   :  { %v2329_v54 = vpop.f32.mrf.mxu1  ;;  %2376 = vmatpush3.msra.mxu1 %v2191_v35 }
 0x57d   :  { %2391 = vmatprep.subr.mxu1 %v2043_v38 }
 0x5ca   :  { %v1253_v55 = vpop.f32.mrf.mxu1 }
 0x5cc   :  { %v2339_v56 = vpop.f32.mrf.mxu1 }
 0x5ce   :  { %v1177_v57 = vpop.f32.mrf.mxu0 }
 0x5cf   :  { %2362 = vmatprep.mubr.msk.f32.mxu0 %vm230_vm2, %v1177_v57 }
 0x5d0   :  { %v2334_v58 = vpop.f32.mrf.mxu0  ;;  %2363 = vmatmul.mubr.msk.f32.vlgmr.msra.gmra.mxu0 %vm230_vm2, %v1253_v55 }
 0x5d1   :  { %2371 = vmatpush3.msra.mxu0 %v2188_v50  ;;  %v2195_v50 = vld [vmem:[#allocation7 + $0x2] ss:$0 sm:$0xff]  ;;  %v2039_v58 = vld [vmem:[%s2908_s8 + $0x18] sm:$0xff] }
 0x5d2   :  { %v1405_v59 = vpop.f32.mrf.mxu1  ;;  %2380 = vmatprep.subr.mxu0 %v1945_v32 }
 0x5d3   :  { %v1329_v60 = vpop.f32.mrf.mxu0 }
 0x5d4   :  { %2372 = vmatprep.mubr.msk.f32.mxu0 %vm230_vm2, %v1329_v60  ;;  %v2349_v61 = vpop.f32.mrf.mxu1  ;;  %v2037_v60 = vld [vmem:[%s2908_s8 + $0x8] sm:$0xff] }
 0x5d5   :  { %v2344_v62 = vpop.f32.mrf.mxu0  ;;  %2373 = vmatmul.mubr.msk.f32.vlgmr.msra.gmra.mxu0 %vm230_vm2, %v1405_v59  ;;  %v2038_v59 = vld [vmem:[%s2908_s8 + $0x10] sm:$0xff]  ;;  %v2036_v61 = vld [vmem:[%s2908_s8] sm:$0xff]  ;;  %s2565_s8 = smov [#allocation8]  }
 0x5d6   :  { %v1557_v63 = vpop.f32.mrf.mxu1  ;;  %2381 = vmatpush3.msra.mxu0 %v1945_v32  ;;  %v2197_v62 = vld [vmem:[%s2907_s7] ss:$0 sm:$0xff]  ;;  %s2139_s5 = sshll.u32 %s2565_s8, 4  ;;  %s2140_s5 = int_to_ptr.vmem [resolvable:$true] %s2139_s5 }
 0x5d7   :  { %v1481_v2 = vpop.f32.mrf.mxu0  ;;  %2382 = vmatprep.subr.mxu0 %v1944_v33  ;;  %s2525_s7 = scalar_lea.vmem %s2140_s5, 256  ;;  %p2530_p2 = scmp.lt.s32.totalorder %s2140_s5, %s2140_s5 }
 0x5d8   :  { %2377 = vmatprep.mubr.msk.f32.mxu1 %vm230_vm2, %v1481_v2  ;;  %v2359_v3 = vpop.f32.mrf.mxu1  ;;  %2383 = vmatpush3.msra.mxu0 %v1944_v33  ;;  %p2526_p1 = scmp.ne.s32.totalorder %s2140_s5, %s2525_s7  ;;  %p2531_p3 = scmp.lt.s32.totalorder %s2525_s7, %s2525_s7 }
 0x5d9   :  { %v2354_v4 = vpop.f32.mrf.mxu0  ;;  %2378 = vmatmul.mubr.msk.f32.vlgmr.msra.gmra.mxu1 %vm230_vm2, %v1557_v63  ;;  %2384 = vmatprep.subr.mxu0 %v1943_v34 }
 0x5da   :  { %2385 = vmatpush3.msra.mxu0 %v1943_v34  ;;  %2392 = vmatpush3.msra.mxu1 %v2043_v38  ;;  %p2532_p4 = por %p2531_p3, %p2530_p2 }
 0x5db   :  { %2386 = vmatprep.subr.mxu0 %v1942_v36  ;;  %2393 = vmatprep.subr.mxu1 %v2042_v45 }
 0x5dc   :  { %2387 = vmatpush3.msra.mxu0 %v1942_v36  ;;  %2394 = vmatpush3.msra.mxu1 %v2042_v45  ;;  %p2533_p5 = pnand %p2532_p4, %p2526_p1 }
 0x5dd   :  { %2395 = vmatprep.subr.mxu1 %v2041_v37 }
 0x5de   :  { %2396 = vmatpush3.msra.mxu1 %v2041_v37 }
 0x5df   :  { %2397 = vmatprep.subr.mxu1 %v2040_v47 }
 0x5e0   :  { %2398 = vmatpush3.msra.mxu1 %v2040_v47 }
 0x5e1   :  { %2399 = vmatprep.subr.mxu1 %v2039_v58 }
 0x5e2   :  { %2400 = vmatpush3.msra.mxu1 %v2039_v58 }
 0x5e3   :  { %2401 = vmatprep.subr.mxu1 %v2038_v59 }
 0x5e4   :  { %2402 = vmatpush3.msra.mxu1 %v2038_v59 }
 0x5e5   :  { %2403 = vmatprep.subr.mxu1 %v2037_v60 }
 0x5e6   :  { %2404 = vmatpush3.msra.mxu1 %v2037_v60 }
 0x5e7   :  { %2405 = vmatprep.subr.mxu1 %v2036_v61 }
 0x5e8   :  { %2406 = vmatpush3.msra.mxu1 %v2036_v61 }
 0x63b   :  { %v2369_v7 = vpop.f32.mrf.mxu1 }
 0x63d   :  { %v1717_v10 = vpop.f32.mrf.mxu1 }
 0x690   :  { %v2364_v5 = vpop.f32.mrf.mxu0 }
 0x691   :  { %v1723_v9 = vadd.f32 %v2369_v7, %v2364_v5  ;;  %v2200_v7 = vld [vmem:[#allocation7 + $0x5] ss:$0 sm:$0xff] }
 0x692   :  { %v1636_v6 = vpop.f32.mrf.mxu0 }
 0x693   :  { %v1718_v12 = vadd.f32 %v1717_v10, %v1636_v6 }
 0x695   :  { %v2374_v8 = vpop.f32.mrf.mxu0 }
 0x696   :  { %v1810_v13 = vadd.f32 %v2374_v8, %v1723_v9 }
 0x697   :  { %v1800_v11 = vpop.f32.mrf.mxu0 }
 0x698   :  { %v1809_v15 = vadd.f32 %v1800_v11, %v1718_v12 }
 0x699   :  { %v2379_v14 = vpop.f32.mrf.mxu1 }
 0x69a   :  { %v1895_v16 = vadd.f32 %v2379_v14, %v1810_v13 }
 0x69b   :  { %v1885_v18 = vpop.f32.mrf.mxu1 }
 0x69c   :  { %v1897_v19 = vadd.f32 %v1895_v16, %v2630_v1  ;;  %v1894_v20 = vadd.f32 %v1885_v18, %v1809_v15 }
 0x69e   :  { %v2836_v21 = vadd.f32 %v2194_v17, %v1897_v19  ;;  %v1896_v22 = vadd.f32 %v1894_v20, %v2628_v0 }
 0x6a0   :  { %v2839_v23 = vadd.f32 %v2194_v17, %v1896_v22  ;;  %v1907_v24 = vsel %vm80_vm0, %v2836_v21, 0.0 }
 0x6a1   :  { %1908 = vadd.xlane.f32.xlu1 %v1907_v24 }
 0x6a2   :  { %v1904_v43 = vsel %vm80_vm0, %v2839_v23, 0.0 }
 0x6a3   :  { %1905 = vadd.xlane.f32.xlu0 %v1904_v43 }
 0x72a   :  { %v1909_v46 = vpop.xlane.xlu1 %1908 }
 0x72b   :  { %v1911_v25 = vmul.f32 0.03125, %v1909_v46 }
 0x72c   :  { %v1906_v26 = vpop.xlane.xlu0 %1905 }
 0x72d   :  { %v1910_v27 = vmul.f32 0.03125, %v1906_v26  ;;  %v1913_v1 = vsub.f32 %v2836_v21, %v1911_v25 }
 0x72f   :  { %v1912_v28 = vsub.f32 %v2839_v23, %v1910_v27  ;;  %v1915_v30 = vmul.f32 %v1913_v1, %v1913_v1 }
 0x731   :  { %v1914_v29 = vmul.f32 %v1912_v28, %v1912_v28  ;;  %v1919_v31 = vsel %vm80_vm0, %v1915_v30, 0.0 }
 0x733   :  { %v1916_v0 = vsel %vm80_vm0, %v1914_v29, 0.0 }
 0x734   :  { %1917 = vadd.xlane.f32.xlu0 %v1916_v0 }
 0x738   :  { %1920 = vadd.xlane.f32.xlu0 %v1919_v31 }
 0x7bd   :  { %v1918_v41 = vpop.xlane.xlu0 %1917 }
 0x7be   :  { %v1922_v39 = vmul.f32 0.03125, %v1918_v41 }
 0x7c0   :  { %v1924_v40 = vadd.f32 1e-05, %v1922_v39 }
 0x7c1   :  { %v1921_v42 = vpop.xlane.xlu0 %1920 }
 0x7c2   :  { %2461 = vrsqrt.f32 %v1924_v40  ;;  %v1923_v44 = vmul.f32 0.03125, %v1921_v42 }
 0x7c4   :  { %v1925_v48 = vadd.f32 1e-05, %v1923_v44 }
 0x7c6   :  { %2463 = vrsqrt.f32 %v1925_v48 }
 0x7cf   :  { %v2462_v49 = vpop.eup %2461 }
 0x7d0   :  { %v1928_v35 = vmul.f32 %v2462_v49, %v1912_v28 }
 0x7d2   :  { %v1934_v52 = vmul.f32 %v2195_v50, %v1928_v35 }
 0x7d3   :  { %v2464_v53 = vpop.eup %2463 }
 0x7d4   :  { %v1929_v54 = vmul.f32 %v2464_v53, %v1913_v1  ;;  %v1940_v55 = vadd.f32 %v2196_v51, %v1934_v52 }
 0x7d6   :  { %v1935_v56 = vmul.f32 %v2195_v50, %v1929_v54  ;;  %2388 = vmatprep.mubr.msk.f32.mxu0 %vm80_vm0, %v1940_v55 }
 0x7d8   :  { %v1941_v57 = vadd.f32 %v2196_v51, %v1935_v56 }
 0x7da   :  { %2389 = vmatmul.mubr.msk.f32.vlgmr.msra.gmra.mxu0 %vm80_vm0, %v1941_v57 }
 0x89a   :  { %v2390_v63 = vpop.f32.mrf.mxu0 }
 0x89b   :  { %v2031_v2 = vadd.f32 %v2390_v63, %v2197_v62 }
 0x89c   :  { %v2025_v3 = vpop.f32.mrf.mxu0 }
 0x89d   :  { %v2026_v4 = vadd.f32 %v2197_v62, %v2025_v3  ;;  %v2035_v6 = vmax.f32 %v2031_v2, 0.0 }
 0x89f   :  { %v2034_v5 = vmax.f32 %v2026_v4, 0.0 }
 0x8a1   :  { %2407 = vmatprep.mubr.msk.f32.mxu1 %vm2048_vm3, %v2034_v5 }
 0x8a2   :  { %2408 = vmatmul.mubr.msk.f32.vlgmr.msra.gmra.mxu1 %vm2048_vm3, %v2035_v6 }
 0x962   :  { %v2409_v8 = vpop.f32.mrf.mxu1 }
 0x963   :  { %v2127_v9 = vadd.f32 %v2409_v8, %v2200_v7 }
 0x964   :  { %v2121_v10 = vpop.f32.mrf.mxu1 }
 0x965   :  { %v2131_v11 = vadd.f32 %v2127_v9, %v2836_v21  ;;  %v2122_v12 = vadd.f32 %v2200_v7, %v2121_v10 }
 0x967   :  { %2133 = vst.msk [vmem:[#allocation8 + $0x8] sm:$0xff] %vm80_vm0, %v2131_v11  ;;  %v2130_v13 = vadd.f32 %v2122_v12, %v2839_v23 }
 0x969   :  { %2132 = vst.msk [vmem:[#allocation8] sm:$0xff] %vm80_vm0, %v2130_v13 }
 0x96a   :  { %2536 = shalt.err (!%p2533_p5)
}
 0x96b   :  { %2145 = dma.vmem_to_hbm [thread:$0]  %s2140_s5, 256, %s2909_s9, [#allocation4], %s2555_s19, %s2555_s19, %s2556_s20  }
 0x96c   :  { %2549 = dma.done.wait [#allocation4], 256  }
 0x96d   :  { %2550 = vsyncadd [#allocation4], 4294967040 }
 0x96e   :  { %2149 = vsyncpa [#allocation3], 1 }
 0x96f   :  { %2150 = vsyncpa [#allocation6], 1 }
 0x970   :  { %2151 = vsyncpa [#allocation4], 1 }

</bundles_post_ra>
